<compile_context>
chip_gen: v6e
topology: v6e:2x2x1
jax: 0.10.0
libtpu: 0.0.40
codegen_flags: <defaults>
</compile_context>

<pallas_src>
import functools

import jax
import jax.numpy as jnp
from jax.experimental import pallas as pl
from jax.experimental.pallas import tpu as pltpu


def _conv_sum_kernel(p_ref, w_ref, b_ref, o_ref, *, n_items, b_blk, hw):
    """One grid step = one block of b_blk batch items.

    p_ref: (b_blk, 9, H*W) im2col patches for this block of items   (VMEM)
    w_ref: (16, 9)         conv weights, tap-major (dy*3+dx)
    b_ref: (16, 1)         conv bias (out-channel in sublanes)
    o_ref: (16, H*W)       accumulator, resident across the whole grid
    """
    i = pl.program_id(0)

    @pl.when(i == 0)
    def _():
        o_ref[...] = jnp.zeros_like(o_ref)

    w = w_ref[...]                                         # (16, 9)
    bias = jnp.broadcast_to(b_ref[...], (16, hw))          # hoisted broadcast
    base = i * b_blk

    def body(b, acc):
        patch = p_ref[b]                                   # (9, H*W)
        y = jnp.dot(w, patch, preferred_element_type=jnp.float32)  # (16, H*W)
        y = jnp.maximum(y + bias, 0.0)                     # per-item bias+ReLU
        # mask out zero-padded tail items of the last batch block
        y = jnp.where(base + b < n_items, y, 0.0)
        return acc + y

    acc = jax.lax.fori_loop(0, b_blk, body,
                            jnp.zeros((16, hw), jnp.float32),
                            unroll=min(8, b_blk))
    o_ref[...] += acc


def loop_minist_forward(img_nchw, weight, bias, *, b_blk_max=128):
    """img_nchw: (N, 1, H, W) f32; weight: (16, 1, 3, 3); bias: (16,).

    Returns (1, 16, H, W) f32, matching the PyTorch module.
    """
    N, C, H, W = img_nchw.shape
    assert C == 1
    HW = H * W

    # ---- wrapper-side layout plumbing: pad + im2col, lane-dense for kernel ----
    x = img_nchw[:, 0, :, :]                               # (N, H, W)
    x_pad = jnp.pad(x, ((0, 0), (1, 1), (1, 1)))           # (N, H+2, W+2)
    taps = [x_pad[:, dy:dy + H, dx:dx + W].reshape(N, HW)
            for dy in range(3) for dx in range(3)]
    patches = jnp.stack(taps, axis=1).astype(jnp.float32)  # (N, 9, H*W)

    # Batch blocking: pad N up to a multiple of b_blk (tail masked in-kernel).
    b_blk = max(1, min(b_blk_max, N))
    n_blocks = -(-N // b_blk)
    n_pad = n_blocks * b_blk
    if n_pad != N:
        patches = jnp.pad(patches, ((0, n_pad - N), (0, 0), (0, 0)))

    # Weights to (16, 9): tap-major (dy*3+dx), out-channel in sublanes.
    w_mat = weight.reshape(16, 9).astype(jnp.float32)      # (16, 9)
    b_mat = bias.reshape(16, 1).astype(jnp.float32)        # (16, 1)

    kernel = functools.partial(_conv_sum_kernel, n_items=N, b_blk=b_blk, hw=HW)

    out_flat = pl.pallas_call(
        kernel,
        out_shape=jax.ShapeDtypeStruct((16, HW), jnp.float32),
        grid_spec=pltpu.PrefetchScalarGridSpec(
            num_scalar_prefetch=0,
            grid=(n_blocks,),
            in_specs=[
                pl.BlockSpec((b_blk, 9, HW), lambda i: (i, 0, 0)),
                pl.BlockSpec((16, 9), lambda i: (0, 0)),
                pl.BlockSpec((16, 1), lambda i: (0, 0)),
            ],
            # same output block every step -> VMEM-resident accumulator
            out_specs=pl.BlockSpec((16, HW), lambda i: (0, 0)),
        ),
        compiler_params=pltpu.CompilerParams(
            dimension_semantics=("arbitrary",),  # sequential batch accumulation
        ),
    )(patches, w_mat, b_mat)

    # (16, H*W) -> (1, 16, H, W): channel-major already, just reshape.
    return out_flat.reshape(16, H, W)[None]


def _reference_forward(img_nchw, weight, bias):
    """Pure-JAX reference of the PyTorch forward (for sanity checking)."""
    y = jax.lax.conv_general_dilated(
        img_nchw, weight, window_strides=(1, 1), padding=((1, 1), (1, 1)),
        dimension_numbers=("NCHW", "OIHW", "NCHW"))
    y = jnp.maximum(y + bias[None, :, None, None], 0.0)
    return jnp.sum(y, axis=0, keepdims=True)


if __name__ == "__main__":
    key = jax.random.PRNGKey(0)
    k_x, k_w, k_b = jax.random.split(key, 3)

    # Small MNIST-like shapes: batch=2, single channel, 16x16 spatial.
    N, H, W = 2, 16, 16
    img = jax.random.normal(k_x, (N, 1, H, W), dtype=jnp.float32)

    # Deterministic parameter init (Conv2d(1, 16, 3) shapes).
    weight = 0.1 * jax.random.normal(k_w, (16, 1, 3, 3), dtype=jnp.float32)
    bias = 0.1 * jax.random.normal(k_b, (16,), dtype=jnp.float32)

    out = loop_minist_forward(img, weight, bias)
    out = jax.block_until_ready(out)

    ref = _reference_forward(img, weight, bias)
    assert out.shape == (1, 16, H, W)
    assert jnp.allclose(out, ref, atol=1e-4, rtol=1e-4)

    print("KERNEL_OK")
</pallas_src>

<mosaic_0001>
module attributes {stable_mosaic.version = 11 : i64} {
  func.func @_conv_sum_kernel(%arg0: i32, %arg1: memref<2x9x256xf32, #tpu.memory_space<vmem>>, %arg2: memref<16x9xf32, #tpu.memory_space<vmem>>, %arg3: memref<16x1xf32, #tpu.memory_space<vmem>>, %arg4: memref<16x256xf32, #tpu.memory_space<vmem>>) attributes {dimension_semantics = [#tpu.dimension_semantics<arbitrary>], iteration_bounds = array<i64: 1>, scalar_prefetch = 0 : i64, scratch_operands = 0 : i64, tpu.core_type = #tpu.core_type<tc>, window_params = [{transform_indices = @transform_0, window_bounds = array<i64: 2, 9, 256>}, {pipeline_mode = #tpu.pipeline_mode<synchronous>, transform_indices = @transform_1, window_bounds = array<i64: 16, 9>}, {pipeline_mode = #tpu.pipeline_mode<synchronous>, transform_indices = @transform_2, window_bounds = array<i64: 16, 1>}, {pipeline_mode = #tpu.pipeline_mode<synchronous>, transform_indices = @transform_3, window_bounds = array<i64: 16, 256>}]} {
    %c0_i32 = arith.constant 0 : i32
    %0 = arith.cmpi eq, %arg0, %c0_i32 : i32
    %1 = arith.extui %0 : i1 to i32
    %c0_i32_0 = arith.constant 0 : i32
    %2 = arith.cmpi ne, %1, %c0_i32_0 : i32
    scf.if %2 {
      %cst_22 = arith.constant 0.000000e+00 : f32
      %36 = vector.broadcast %cst_22 : f32 to vector<16x256xf32>
      %c0_23 = arith.constant 0 : index
      %c0_24 = arith.constant 0 : index
      %37 = vector.load %arg4[%c0_23, %c0_24] : memref<16x256xf32, #tpu.memory_space<vmem>>, vector<16x256xf32>
      tpu.vector_store %arg4[%c0_23, %c0_24], %36 {strides = array<i32>} : memref<16x256xf32, #tpu.memory_space<vmem>>, vector<16x256xf32>,
    } else {
    }
    %c0 = arith.constant 0 : index
    %c0_1 = arith.constant 0 : index
    %3 = vector.load %arg2[%c0, %c0_1] : memref<16x9xf32, #tpu.memory_space<vmem>>, vector<16x9xf32>
    %c0_2 = arith.constant 0 : index
    %c0_3 = arith.constant 0 : index
    %4 = vector.load %arg3[%c0_2, %c0_3] : memref<16x1xf32, #tpu.memory_space<vmem>>, vector<16x1xf32>
    %5 = vector.shape_cast %4 : vector<16x1xf32> to vector<16x1xf32>
    %6 = vector.broadcast %5 : vector<16x1xf32> to vector<16x256xf32>
    %c2_i32 = arith.constant 2 : i32
    %7 = arith.muli %arg0, %c2_i32 : i32
    %cst = arith.constant 0.000000e+00 : f32
    %8 = vector.broadcast %cst : f32 to vector<16x256xf32>
    %c0_i32_4 = arith.constant 0 : i32
    %9 = arith.index_cast %c0_i32_4 : i32 to index
    %c0_5 = arith.constant 0 : index
    %c0_6 = arith.constant 0 : index
    %10 = vector.load %arg1[%9, %c0_5, %c0_6] : memref<2x9x256xf32, #tpu.memory_space<vmem>>, vector<1x9x256xf32>
    %11 = vector.shape_cast %10 : vector<1x9x256xf32> to vector<9x256xf32>
    %cst_7 = arith.constant dense<0.000000e+00> : vector<16x256xf32>
    %12 = tpu.matmul %3, %11, %cst_7 {dimension_numbers = #tpu.dot_dimension_numbers<[1], [0], [0], [1], [0, 0, 1, 1], [], []>} : vector<16x9xf32>, vector<9x256xf32>, vector<16x256xf32> -> vector<16x256xf32>
    %13 = arith.addf %12, %6 : vector<16x256xf32>
    %cst_8 = arith.constant 0.000000e+00 : f32
    %14 = vector.broadcast %cst_8 : f32 to vector<16x256xf32>
    %15 = arith.maximumf %13, %14 : vector<16x256xf32>
    %16 = arith.addi %7, %c0_i32_4 : i32
    %c2_i32_9 = arith.constant 2 : i32
    %17 = arith.cmpi slt, %16, %c2_i32_9 : i32
    %cst_10 = arith.constant 0.000000e+00 : f32
    %18 = vector.broadcast %cst_10 : f32 to vector<16x256xf32>
    %19 = arith.select %17, %15, %18 : vector<16x256xf32>
    %20 = arith.addf %8, %19 : vector<16x256xf32>
    %c1_i32 = arith.constant 1 : i32
    %21 = arith.index_cast %c1_i32 : i32 to index
    %c0_11 = arith.constant 0 : index
    %c0_12 = arith.constant 0 : index
    %22 = vector.load %arg1[%21, %c0_11, %c0_12] : memref<2x9x256xf32, #tpu.memory_space<vmem>>, vector<1x9x256xf32>
    %23 = vector.shape_cast %22 : vector<1x9x256xf32> to vector<9x256xf32>
    %cst_13 = arith.constant dense<0.000000e+00> : vector<16x256xf32>
    %24 = tpu.matmul %3, %23, %cst_13 {dimension_numbers = #tpu.dot_dimension_numbers<[1], [0], [0], [1], [0, 0, 1, 1], [], []>} : vector<16x9xf32>, vector<9x256xf32>, vector<16x256xf32> -> vector<16x256xf32>
    %25 = arith.addf %24, %6 : vector<16x256xf32>
    %cst_14 = arith.constant 0.000000e+00 : f32
    %26 = vector.broadcast %cst_14 : f32 to vector<16x256xf32>
    %27 = arith.maximumf %25, %26 : vector<16x256xf32>
    %28 = arith.addi %7, %c1_i32 : i32
    %c2_i32_15 = arith.constant 2 : i32
    %29 = arith.cmpi slt, %28, %c2_i32_15 : i32
    %cst_16 = arith.constant 0.000000e+00 : f32
    %30 = vector.broadcast %cst_16 : f32 to vector<16x256xf32>
    %31 = arith.select %29, %27, %30 : vector<16x256xf32>
    %32 = arith.addf %20, %31 : vector<16x256xf32>
    %c2_i32_17 = arith.constant 2 : i32
    %c0_18 = arith.constant 0 : index
    %c0_19 = arith.constant 0 : index
    %33 = vector.load %arg4[%c0_18, %c0_19] : memref<16x256xf32, #tpu.memory_space<vmem>>, vector<16x256xf32>
    %34 = arith.addf %33, %32 : vector<16x256xf32>
    %c0_20 = arith.constant 0 : index
    %c0_21 = arith.constant 0 : index
    %35 = vector.load %arg4[%c0_20, %c0_21] : memref<16x256xf32, #tpu.memory_space<vmem>>, vector<16x256xf32>
    tpu.vector_store %arg4[%c0_20, %c0_21], %34 {strides = array<i32>} : memref<16x256xf32, #tpu.memory_space<vmem>>, vector<16x256xf32>,
    return
  }
  func.func @transform_0(%arg0: i32) -> (i32, i32, i32) {
    %c0_i32 = arith.constant 0 : i32
    %c0_i32_0 = arith.constant 0 : i32
    %c0_i32_1 = arith.constant 0 : i32
    return %arg0, %c0_i32, %c0_i32_0 : i32, i32, i32
  }
  func.func @transform_1(%arg0: i32) -> (i32, i32) {
    %c0_i32 = arith.constant 0 : i32
    %c0_i32_0 = arith.constant 0 : i32
    %c0_i32_1 = arith.constant 0 : i32
    return %c0_i32, %c0_i32_0 : i32, i32
  }
  func.func @transform_2(%arg0: i32) -> (i32, i32) {
    %c0_i32 = arith.constant 0 : i32
    %c0_i32_0 = arith.constant 0 : i32
    %c0_i32_1 = arith.constant 0 : i32
    return %c0_i32, %c0_i32_0 : i32, i32
  }
  func.func @transform_3(%arg0: i32) -> (i32, i32) {
    %c0_i32 = arith.constant 0 : i32
    %c0_i32_0 = arith.constant 0 : i32
    %c0_i32_1 = arith.constant 0 : i32
    return %c0_i32, %c0_i32_0 : i32, i32
  }
}

</mosaic_0001>

<bundles_post_ra>
// kernel: tpu_custom_call.1
= control target key start
LH: loop header
LB: loop body
LE: loop exit
PB: predicated region body
PF: predicated region fallthrough
CT: control target
= control target key end

     0   :  { %vm49_vm0 = vcmask 1040384   ;;  %vm42_vm1 = vcmask 72704   ;;  %v322_v9 = vmov 0.0   ;;  %s390_s0 = inlined_call_operand.vmem [shape: f32[2,9,256], index: 0, kind: input, shape index: {}]   ;;  %s391_s1 = inlined_call_operand.vmem [shape: f32[16,9], index: 1, kind: input, shape index: {}]   ;;  %s392_s2 = inlined_call_operand.vmem [shape: f32[16,1], index: 2, kind: input, shape index: {}]   ;;  %s393_s3 = inlined_call_operand.hbm [shape: f32[16,256], index: 3, kind: output, shape index: {}]  }
   0x1   :  { %v41_v0 = vld [vmem:[%s390_s0 + $0x18] sm:$0x1]  ;;  %v39_v2 = vld [vmem:[%s390_s0 + $0x8] sm:$0xff]  ;;  %v40_v3 = vld [vmem:[%s390_s0 + $0x10] sm:$0x1]  ;;  %120 = vmatprep.mubr.f32.mxu0 %v322_v9 }
   0x2   :  { %v289_v1 = vld [vmem:[%s390_s0 + $0x38] sm:$0x1]  ;;  %282 = vmatprep.subr.msk.mxu0 %vm49_vm0, %v41_v0  ;;  %v288_v4 = vld [vmem:[%s390_s0 + $0x30] sm:$0x1]  ;;  %v287_v5 = vld [vmem:[%s390_s0 + $0x28] sm:$0xff] }
   0x3   :  { %290 = vmatprep.subr.msk.mxu1 %vm49_vm0, %v289_v1  ;;  %283 = vmatpush1.msk.msra.mxu0 %vm49_vm0, %v40_v3  ;;  %v38_v6 = vld [vmem:[%s390_s0] sm:$0xff] }
   0x4   :  { %291 = vmatpush1.msk.msra.mxu1 %vm49_vm0, %v288_v4  ;;  %v286_v7 = vld [vmem:[%s390_s0 + $0x20] sm:$0xff]  ;;  %86 = vmatprep.subr.mxu0 %v39_v2 }
   0x5   :  { %190 = vmatprep.subr.mxu1 %v287_v5  ;;  %v23_v8 = vld [vmem:[%s391_s1] sm:$0xff]  ;;  %87 = vmatpush1.msra.mxu0 %v38_v6 }
   0x6   :  { %8 = vsyncpa [#allocation3], 0  ;;  %191 = vmatpush1.msra.mxu1 %v286_v7  ;;  %224 = vmatprep.mubr.f32.mxu1 %v322_v9  ;;  %v25_v10 = vld [vmem:[%s392_s2] sm:$0xff]  ;;  %v24_v11 = vld [vmem:[%s391_s1 + $0x8] sm:$0xff]  ;;  %v323_v12 = vmov 0   ;;  %s324_s1 = smov [#allocation2]  }
   0x7   :  { %284 = vmatmul.mubr.msk.f32.vlgmr.msra.gmra.mxu0 %vm42_vm1, %v23_v8  ;;  %292 = vmatmul.mubr.msk.f32.vlgmr.msra.gmra.mxu1 %vm42_vm1, %v23_v8  ;;  %v26_v13 = vld [vmem:[%s392_s2 + $0x8] sm:$0xff]  ;;  %s271_s2 = sshll.u32 %s324_s1, 4  ;;  %s272_s2 = int_to_ptr.vmem [resolvable:$true] %s271_s2 }
   0x8   :  { %126 = vmatprep.mubr.f32.mxu0 %v322_v9  ;;  %230 = vmatprep.mubr.f32.mxu1 %v322_v9  ;;  %s300_s8 = scalar_lea.vmem %s272_s2, 512  ;;  %p305_p1 = scmp.lt.s32.totalorder %s272_s2, %s272_s2 }
   0x9   :  { %299 = vset.pattern.permute.xlu0 %v323_v12  ;;  %p301_p0 = scmp.ne.s32.totalorder %s272_s2, %s300_s8  ;;  %p306_p2 = scmp.lt.s32.totalorder %s300_s8, %s300_s8 }
   0xa   :  { %29 = vperm.xlu0 %299, %v25_v10  }
   0xb   :  { %285 = vmatmul.mubr.msk.f32.gmra.mxu0 %vm42_vm1, %v24_v11  ;;  %293 = vmatmul.mubr.msk.f32.gmra.mxu1 %vm42_vm1, %v24_v11  ;;  %p307_p3 = por %p306_p2, %p305_p1 }
   0xd   :  { %p308_p4 = pnand %p307_p3, %p301_p0 }
   0xe   :  { %34 = vperm.xlu0 %299, %v26_v13  }
  0x85   :  { %v30_v14 = vpop.permute.xlu0 %29 }
  0x89   :  { %v35_v23 = vpop.permute.xlu0 %34 }
  0xc7   :  { %v122_v15 = vpop.f32.mrf.mxu0  ;;  %v226_v16 = vpop.f32.mrf.mxu1 }
  0xc8   :  { %v123_v17 = vadd.f32 %v122_v15, %v30_v14  ;;  %v227_v18 = vadd.f32 %v226_v16, %v30_v14 }
  0xc9   :  { %v124_v19 = vpop.f32.mrf.mxu0  ;;  %v228_v20 = vpop.f32.mrf.mxu1 }
  0xca   :  { %v133_v21 = vmax.f32 %v123_v17, 0.0  ;;  %v237_v22 = vmax.f32 %v227_v18, 0.0  ;;  %v125_v24 = vadd.f32 %v124_v19, %v30_v14  ;;  %v229_v25 = vadd.f32 %v228_v20, %v30_v14 }
  0xcb   :  { %v128_v26 = vpop.f32.mrf.mxu0  ;;  %v232_v27 = vpop.f32.mrf.mxu1 }
  0xcc   :  { %v250_v28 = vadd.f32 %v237_v22, %v133_v21  ;;  %v134_v29 = vmax.f32 %v125_v24, 0.0  ;;  %v238_v30 = vmax.f32 %v229_v25, 0.0  ;;  %v129_v31 = vadd.f32 %v128_v26, %v35_v23 }
  0xcd   :  { %v233_v32 = vadd.f32 %v232_v27, %v35_v23  ;;  %v130_v33 = vpop.f32.mrf.mxu0  ;;  %v234_v34 = vpop.f32.mrf.mxu1 }
  0xce   :  { %v251_v35 = vadd.f32 %v238_v30, %v134_v29  ;;  %v135_v36 = vmax.f32 %v129_v31, 0.0  ;;  %v131_v37 = vadd.f32 %v130_v33, %v35_v23  ;;  %v235_v39 = vadd.f32 %v234_v34, %v35_v23  ;;  %262 = vst [vmem:[#allocation2] sm:$0xff] %v250_v28 }
  0xcf   :  { %v239_v38 = vmax.f32 %v233_v32, 0.0 }
  0xd0   :  { %v136_v40 = vmax.f32 %v131_v37, 0.0  ;;  %v240_v42 = vmax.f32 %v235_v39, 0.0  ;;  %263 = vst [vmem:[#allocation2 + $0x8] sm:$0xff] %v251_v35 }
  0xd1   :  { %v252_v41 = vadd.f32 %v239_v38, %v135_v36 }
  0xd2   :  { %v253_v43 = vadd.f32 %v240_v42, %v136_v40 }
  0xd3   :  { %264 = vst [vmem:[#allocation2 + $0x10] sm:$0xff] %v252_v41 }
  0xd4   :  { %265 = vst [vmem:[#allocation2 + $0x18] sm:$0xff] %v253_v43 }
  0xd5   :  { %311 = shalt.err (!%p308_p4)
}
  0xd6   :  { %s325_s9 = smov 256   ;;  %s326_s10 = smov 16  }
  0xd7   :  { %277 = dma.vmem_to_hbm [thread:$0]  %s272_s2, 512, %s393_s3, [#allocation3], %s325_s9, %s325_s9, %s326_s10  }
  0xd8   :  { %320 = dma.done.wait [#allocation3], 512  }
  0xd9   :  { %321 = vsyncadd [#allocation3], 4294966784 }
  0xda   :  { %281 = vsyncpa [#allocation3], 1 }

</bundles_post_ra>
